<compile_context>
chip_gen: v7x
topology: tpu7x:2x2x1
jax: 0.10.0
libtpu: 0.0.40
codegen_flags: <defaults>
</compile_context>

<pallas_src>
import functools

import jax
import jax.numpy as jnp
from jax.experimental import pallas as pl
from jax.experimental.pallas import tpu as pltpu

# ---------------------------------------------------------------------------
# Model hyper-parameters (small, consistent with the module's __init__ args)
# ---------------------------------------------------------------------------
BATCH = 8
INPUT_SIZE = 32              # must be a multiple of 8 for the no-pad fast path
HIDDEN_SIZE = 32
NUM_HIDDEN_LAYERS = 2
ACTIVATION = "gelu"          # relu, tanh, leaky_relu, elu, gelu, selu, swish, mish
GELU_APPROXIMATE = True      # tanh-approx GELU (EUP-backed); False = exact erf (PyTorch default)
BN_EPS = 1e-5
LANE = 128                   # TPU lane width; hidden dim is padded to this


def _round_up(n, m):
    return (n + m - 1) // m * m


def _activation(name, x, gelu_approximate=True):
    if name == "relu":
        return jnp.maximum(x, 0.0)
    if name == "tanh":
        return jnp.tanh(x)
    if name == "leaky_relu":
        return jnp.where(x >= 0, x, 0.01 * x)
    if name == "elu":
        return jnp.where(x >= 0, x, jnp.expm1(x))
    if name == "gelu":
        if gelu_approximate:
            # tanh form: transcendental work goes to the EUP slot (free next to VPU/MXU).
            return jax.nn.gelu(x, approximate=True)
        # Exact erf GELU (nn.GELU() default) -- long VALU polynomial chain.
        return 0.5 * x * (1.0 + jax.lax.erf(x * jnp.float32(0.7071067811865476)))
    if name == "selu":
        alpha = 1.6732632423543772
        scale = 1.0507009873554805
        return scale * jnp.where(x >= 0, x, alpha * jnp.expm1(x))
    if name == "swish":
        return x * jax.nn.sigmoid(x)
    if name == "mish":
        return x * jnp.tanh(jax.nn.softplus(x))
    raise ValueError(f"Unsupported activation function: {name}")


# ---------------------------------------------------------------------------
# Pallas kernel: fused batchnorm(FMA) -> input linear -> [act -> hidden linear] * L
# All refs are whole-array VMEM blocks (single invocation, no grid: everything is a
# handful of vregs, so there is nothing to pipeline at these shapes).
# ---------------------------------------------------------------------------
def base_model_kernel(x_ref, vec_ref, w_in_ref, w_h_ref, o_ref, *,
                      num_hidden_layers, activation, gelu_approximate, d_in, d_h_pad):
    x = x_ref[...]                                            # (B, d_in) f32, unpadded

    # BatchNorm1d, training-mode biased batch statistics, folded into one FMA:
    #   scale = gamma * rsqrt(var + eps), shift = beta - mean * scale.
    mean = jnp.mean(x, axis=0, keepdims=True)                 # (1, d_in)
    var = jnp.mean((x - mean) * (x - mean), axis=0, keepdims=True)
    gamma = vec_ref[0:1, :d_in]
    beta = vec_ref[1:2, :d_in]
    scale = gamma * jax.lax.rsqrt(var + BN_EPS)
    shift = beta - mean * scale
    xn = x * scale + shift                                    # single FMA pass

    # Input linear: (B, d_in) @ (d_in, H_pad) + bias.  Padded weight columns and
    # bias lanes are zero, so output columns >= hidden_size are exactly zero.
    h = jnp.dot(xn, w_in_ref[...], preferred_element_type=jnp.float32)
    h = h + vec_ref[2:3, :d_h_pad]

    # Hidden layers.  Static Python unroll is fine at L=2; switch to
    # lax.fori_loop(..., unroll=True) / a grid axis over l once L grows so weight
    # live ranges don't all stay resident simultaneously.
    for l in range(num_hidden_layers):
        h = _activation(activation, h, gelu_approximate)
        h = jnp.dot(h, w_h_ref[l], preferred_element_type=jnp.float32)
        h = h + vec_ref[3 + l:4 + l, :d_h_pad]

    o_ref[...] = h.astype(o_ref.dtype)                        # lane-dense, unmasked vst


# ---------------------------------------------------------------------------
# Wrappers
# ---------------------------------------------------------------------------
def base_model_forward_padded(x, params, *, num_hidden_layers=NUM_HIDDEN_LAYERS,
                              activation=ACTIVATION, gelu_approximate=GELU_APPROXIMATE):
    """Runs the fused kernel; returns the lane-padded (B, hidden_pad) output.

    Columns >= hidden_size are exactly zero (padded weight columns / bias lanes are
    zero), so consumers that tolerate the padded width can use this directly with no
    extra slice op.
    """
    vec, w_in, w_h = params
    B, d_in = x.shape
    d_in_w, d_h_pad = w_in.shape
    assert d_in == d_in_w, "x feature dim must match w_in rows"
    assert d_in % 8 == 0, "no-pad fast path assumes input_size is a multiple of 8"

    kernel = functools.partial(base_model_kernel,
                               num_hidden_layers=num_hidden_layers,
                               activation=activation,
                               gelu_approximate=gelu_approximate,
                               d_in=d_in,
                               d_h_pad=d_h_pad)

    vmem = pl.BlockSpec(memory_space=pltpu.MemorySpace.VMEM)
    return pl.pallas_call(
        kernel,
        out_shape=jax.ShapeDtypeStruct((B, d_h_pad), jnp.float32),
        in_specs=[vmem] * 4,
        out_specs=vmem,
        # Explicit scoped-VMEM limit (default is 16 MiB on v5e / 32 MiB on v6e,v7x).
        # Trivially sufficient here; revisit + add a batch-tiled grid well before the
        # whole-batch-resident design approaches v7x's 64 MiB physical VMEM.
        compiler_params=pltpu.CompilerParams(vmem_limit_bytes=32 * 1024 * 1024),
    )(x, vec, w_in, w_h)


@functools.partial(jax.jit, static_argnames=("hidden_size", "num_hidden_layers",
                                             "activation", "gelu_approximate"))
def base_model_forward(x, params, *, hidden_size=HIDDEN_SIZE,
                       num_hidden_layers=NUM_HIDDEN_LAYERS, activation=ACTIVATION,
                       gelu_approximate=GELU_APPROXIMATE):
    """Convenience wrapper matching the PyTorch output shape (B, hidden_size).

    The slice back to hidden_size lives inside this jit (single dispatch from Python)
    rather than as a standalone wrapper op.
    """
    out_pad = base_model_forward_padded(x, params,
                                        num_hidden_layers=num_hidden_layers,
                                        activation=activation,
                                        gelu_approximate=gelu_approximate)
    return out_pad[:, :hidden_size]


# ---------------------------------------------------------------------------
# Deterministic parameter initialization (synthetic, PyTorch-like semantics,
# stored pre-transposed + lane-padded on the hidden dim only)
# ---------------------------------------------------------------------------
def init_params(key, input_size, hidden_size, num_hidden_layers):
    d_h_pad = _round_up(hidden_size, LANE)
    pack_w = max(d_h_pad, _round_up(input_size, LANE))

    k_in_w, k_in_b, k_h_w, k_h_b = jax.random.split(key, 4)

    # Packed vector-parameter buffer (one lane-padded array instead of 4 tiny ones):
    #   row 0: BN gamma (1 over real input features, 0 elsewhere)
    #   row 1: BN beta
    #   row 2: input-layer bias (zero in padded lanes)
    #   rows 3..3+L-1: hidden-layer biases (zero in padded lanes)
    vec = jnp.zeros((3 + num_hidden_layers, pack_w), jnp.float32)
    vec = vec.at[0, :input_size].set(1.0)
    b_in = jax.random.normal(k_in_b, (hidden_size,), jnp.float32) * 0.1
    vec = vec.at[2, :hidden_size].set(b_in)
    b_h = jax.random.normal(k_h_b, (num_hidden_layers, hidden_size), jnp.float32) * 0.1
    vec = vec.at[3:, :hidden_size].set(b_h)

    # nn.Linear weights are (out, in) in PyTorch; store pre-transposed (in, out).
    # w_in keeps its real contraction extent (input_size rows, no dead padded rows);
    # only the output dim is lane-padded (padded columns are zero).
    w_in = jnp.zeros((input_size, d_h_pad), jnp.float32)
    w_in = w_in.at[:, :hidden_size].set(
        jax.random.normal(k_in_w, (input_size, hidden_size), jnp.float32) * 0.1)

    w_h = jnp.zeros((num_hidden_layers, d_h_pad, d_h_pad), jnp.float32)
    w_h = w_h.at[:, :hidden_size, :hidden_size].set(
        jax.random.normal(k_h_w, (num_hidden_layers, hidden_size, hidden_size),
                          jnp.float32) * 0.1)

    return vec, w_in, w_h


# ---------------------------------------------------------------------------
# Pure-JAX reference (unpadded math, exact f32 matmuls) for a correctness check
# ---------------------------------------------------------------------------
def reference_forward(x, params, input_size, hidden_size, num_hidden_layers,
                      activation, gelu_approximate):
    vec, w_in, w_h = params
    gamma = vec[0, :input_size]
    beta = vec[1, :input_size]
    b_in = vec[2, :hidden_size]
    b_h = vec[3:, :hidden_size]
    wi = w_in[:, :hidden_size]
    wh = w_h[:, :hidden_size, :hidden_size]

    hi = jax.lax.Precision.HIGHEST
    mean = jnp.mean(x, axis=0, keepdims=True)
    var = jnp.mean((x - mean) ** 2, axis=0, keepdims=True)
    xn = (x - mean) / jnp.sqrt(var + BN_EPS) * gamma + beta
    h = jnp.dot(xn, wi, precision=hi) + b_in
    for l in range(num_hidden_layers):
        h = _activation(activation, h, gelu_approximate)
        h = jnp.dot(h, wh[l], precision=hi) + b_h[l]
    return h


if __name__ == "__main__":
    key = jax.random.PRNGKey(0)
    k_x, k_p = jax.random.split(key)

    x = jax.random.normal(k_x, (BATCH, INPUT_SIZE), jnp.float32)
    params = init_params(k_p, INPUT_SIZE, HIDDEN_SIZE, NUM_HIDDEN_LAYERS)

    out = base_model_forward(x, params)
    out = jax.block_until_ready(out)

    ref = reference_forward(x, params, INPUT_SIZE, HIDDEN_SIZE, NUM_HIDDEN_LAYERS,
                            ACTIVATION, GELU_APPROXIMATE)

    assert out.shape == (BATCH, HIDDEN_SIZE)
    assert bool(jnp.all(jnp.isfinite(out)))
    assert bool(jnp.allclose(out, ref, atol=2e-5, rtol=2e-5)), "mismatch vs reference"
    print("KERNEL_OK")
</pallas_src>

<mosaic_0001>
module attributes {stable_mosaic.version = 11 : i64} {
  func.func @base_model_kernel(%arg0: memref<8x32xf32, #tpu.memory_space<vmem>>, %arg1: memref<5x128xf32, #tpu.memory_space<vmem>>, %arg2: memref<32x128xf32, #tpu.memory_space<vmem>>, %arg3: memref<2x128x128xf32, #tpu.memory_space<vmem>>, %arg4: memref<8x128xf32, #tpu.memory_space<vmem>>) attributes {dimension_semantics = [], scalar_prefetch = 0 : i64, scratch_operands = 0 : i64, tpu.core_type = #tpu.core_type<tc>} {
    %c0 = arith.constant 0 : index
    %c0_0 = arith.constant 0 : index
    %0 = vector.load %arg0[%c0, %c0_0] : memref<8x32xf32, #tpu.memory_space<vmem>>, vector<8x32xf32>
    %cst = arith.constant dense<0.000000e+00> : vector<32xf32>
    %1 = vector.multi_reduction <add>, %0, %cst [0] : vector<8x32xf32> to vector<32xf32>
    %2 = vector.shape_cast %1 : vector<32xf32> to vector<1x32xf32>
    %cst_1 = arith.constant 8.000000e+00 : f32
    %3 = vector.broadcast %cst_1 : f32 to vector<1x32xf32>
    %4 = arith.divf %2, %3 : vector<1x32xf32>
    %5 = vector.broadcast %4 : vector<1x32xf32> to vector<8x32xf32>
    %6 = arith.subf %0, %5 : vector<8x32xf32>
    %7 = vector.broadcast %4 : vector<1x32xf32> to vector<8x32xf32>
    %8 = arith.subf %0, %7 : vector<8x32xf32>
    %9 = arith.mulf %6, %8 : vector<8x32xf32>
    %cst_2 = arith.constant dense<0.000000e+00> : vector<32xf32>
    %10 = vector.multi_reduction <add>, %9, %cst_2 [0] : vector<8x32xf32> to vector<32xf32>
    %11 = vector.shape_cast %10 : vector<32xf32> to vector<1x32xf32>
    %cst_3 = arith.constant 8.000000e+00 : f32
    %12 = vector.broadcast %cst_3 : f32 to vector<1x32xf32>
    %13 = arith.divf %11, %12 : vector<1x32xf32>
    %c0_4 = arith.constant 0 : index
    %c0_5 = arith.constant 0 : index
    %14 = vector.load %arg1[%c0_4, %c0_5] : memref<5x128xf32, #tpu.memory_space<vmem>>, vector<1x32xf32>
    %c1 = arith.constant 1 : index
    %c0_6 = arith.constant 0 : index
    %15 = vector.load %arg1[%c1, %c0_6] : memref<5x128xf32, #tpu.memory_space<vmem>>, vector<1x32xf32>
    %cst_7 = arith.constant 9.99999974E-6 : f32
    %16 = vector.broadcast %cst_7 : f32 to vector<1x32xf32>
    %17 = arith.addf %13, %16 : vector<1x32xf32>
    %18 = math.rsqrt %17 : vector<1x32xf32>
    %19 = arith.mulf %14, %18 : vector<1x32xf32>
    %20 = arith.mulf %4, %19 : vector<1x32xf32>
    %21 = arith.subf %15, %20 : vector<1x32xf32>
    %22 = vector.broadcast %19 : vector<1x32xf32> to vector<8x32xf32>
    %23 = arith.mulf %0, %22 : vector<8x32xf32>
    %24 = vector.broadcast %21 : vector<1x32xf32> to vector<8x32xf32>
    %25 = arith.addf %23, %24 : vector<8x32xf32>
    %c0_8 = arith.constant 0 : index
    %c0_9 = arith.constant 0 : index
    %26 = vector.load %arg2[%c0_8, %c0_9] : memref<32x128xf32, #tpu.memory_space<vmem>>, vector<32x128xf32>
    %cst_10 = arith.constant dense<0.000000e+00> : vector<8x128xf32>
    %27 = tpu.matmul %25, %26, %cst_10 {dimension_numbers = #tpu.dot_dimension_numbers<[1], [0], [0], [1], [0, 0, 1, 1], [], []>} : vector<8x32xf32>, vector<32x128xf32>, vector<8x128xf32> -> vector<8x128xf32>
    %c2 = arith.constant 2 : index
    %c0_11 = arith.constant 0 : index
    %28 = vector.load %arg1[%c2, %c0_11] : memref<5x128xf32, #tpu.memory_space<vmem>>, vector<1x128xf32>
    %29 = vector.broadcast %28 : vector<1x128xf32> to vector<8x128xf32>
    %30 = arith.addf %27, %29 : vector<8x128xf32>
    %31 = arith.mulf %30, %30 : vector<8x128xf32>
    %32 = arith.mulf %30, %31 : vector<8x128xf32>
    %cst_12 = arith.constant 4.471500e-02 : f32
    %33 = vector.broadcast %cst_12 : f32 to vector<8x128xf32>
    %34 = arith.mulf %33, %32 : vector<8x128xf32>
    %35 = arith.addf %30, %34 : vector<8x128xf32>
    %cst_13 = arith.constant 0.797884583 : f32
    %36 = vector.broadcast %cst_13 : f32 to vector<8x128xf32>
    %37 = arith.mulf %36, %35 : vector<8x128xf32>
    %38 = math.tanh %37 : vector<8x128xf32>
    %cst_14 = arith.constant 1.000000e+00 : f32
    %39 = vector.broadcast %cst_14 : f32 to vector<8x128xf32>
    %40 = arith.addf %39, %38 : vector<8x128xf32>
    %cst_15 = arith.constant 5.000000e-01 : f32
    %41 = vector.broadcast %cst_15 : f32 to vector<8x128xf32>
    %42 = arith.mulf %41, %40 : vector<8x128xf32>
    %43 = arith.mulf %30, %42 : vector<8x128xf32>
    %c0_16 = arith.constant 0 : index
    %c0_17 = arith.constant 0 : index
    %c0_18 = arith.constant 0 : index
    %44 = vector.load %arg3[%c0_16, %c0_17, %c0_18] : memref<2x128x128xf32, #tpu.memory_space<vmem>>, vector<1x128x128xf32>
    %45 = vector.shape_cast %44 : vector<1x128x128xf32> to vector<128x128xf32>
    %cst_19 = arith.constant dense<0.000000e+00> : vector<8x128xf32>
    %46 = tpu.matmul %43, %45, %cst_19 {dimension_numbers = #tpu.dot_dimension_numbers<[1], [0], [0], [1], [0, 0, 1, 1], [], []>} : vector<8x128xf32>, vector<128x128xf32>, vector<8x128xf32> -> vector<8x128xf32>
    %c3 = arith.constant 3 : index
    %c0_20 = arith.constant 0 : index
    %47 = vector.load %arg1[%c3, %c0_20] : memref<5x128xf32, #tpu.memory_space<vmem>>, vector<1x128xf32>
    %48 = vector.broadcast %47 : vector<1x128xf32> to vector<8x128xf32>
    %49 = arith.addf %46, %48 : vector<8x128xf32>
    %50 = arith.mulf %49, %49 : vector<8x128xf32>
    %51 = arith.mulf %49, %50 : vector<8x128xf32>
    %cst_21 = arith.constant 4.471500e-02 : f32
    %52 = vector.broadcast %cst_21 : f32 to vector<8x128xf32>
    %53 = arith.mulf %52, %51 : vector<8x128xf32>
    %54 = arith.addf %49, %53 : vector<8x128xf32>
    %cst_22 = arith.constant 0.797884583 : f32
    %55 = vector.broadcast %cst_22 : f32 to vector<8x128xf32>
    %56 = arith.mulf %55, %54 : vector<8x128xf32>
    %57 = math.tanh %56 : vector<8x128xf32>
    %cst_23 = arith.constant 1.000000e+00 : f32
    %58 = vector.broadcast %cst_23 : f32 to vector<8x128xf32>
    %59 = arith.addf %58, %57 : vector<8x128xf32>
    %cst_24 = arith.constant 5.000000e-01 : f32
    %60 = vector.broadcast %cst_24 : f32 to vector<8x128xf32>
    %61 = arith.mulf %60, %59 : vector<8x128xf32>
    %62 = arith.mulf %49, %61 : vector<8x128xf32>
    %c1_25 = arith.constant 1 : index
    %c0_26 = arith.constant 0 : index
    %c0_27 = arith.constant 0 : index
    %63 = vector.load %arg3[%c1_25, %c0_26, %c0_27] : memref<2x128x128xf32, #tpu.memory_space<vmem>>, vector<1x128x128xf32>
    %64 = vector.shape_cast %63 : vector<1x128x128xf32> to vector<128x128xf32>
    %cst_28 = arith.constant dense<0.000000e+00> : vector<8x128xf32>
    %65 = tpu.matmul %62, %64, %cst_28 {dimension_numbers = #tpu.dot_dimension_numbers<[1], [0], [0], [1], [0, 0, 1, 1], [], []>} : vector<8x128xf32>, vector<128x128xf32>, vector<8x128xf32> -> vector<8x128xf32>
    %c4 = arith.constant 4 : index
    %c0_29 = arith.constant 0 : index
    %66 = vector.load %arg1[%c4, %c0_29] : memref<5x128xf32, #tpu.memory_space<vmem>>, vector<1x128xf32>
    %67 = vector.broadcast %66 : vector<1x128xf32> to vector<8x128xf32>
    %68 = arith.addf %65, %67 : vector<8x128xf32>
    %c0_30 = arith.constant 0 : index
    %c0_31 = arith.constant 0 : index
    %69 = vector.load %arg4[%c0_30, %c0_31] : memref<8x128xf32, #tpu.memory_space<vmem>>, vector<8x128xf32>
    tpu.vector_store %arg4[%c0_30, %c0_31], %68 {strides = array<i32>} : memref<8x128xf32, #tpu.memory_space<vmem>>, vector<8x128xf32>,
    return
  }
}

</mosaic_0001>

<bundles_post_ra>
// kernel: base_model_forward.1
= control target key start
LH: loop header
LB: loop body
LE: loop exit
PB: predicated region body
PF: predicated region fallthrough
CT: control target
= control target key end

     0   :  { %9 = vsyncpa [#allocation3], 0  ;;  %s839_s0 = inlined_call_operand.hbm [shape: f32[8,32], index: 0, kind: input, shape index: {}]   ;;  %s840_s1 = inlined_call_operand.hbm [shape: f32[5,128], index: 1, kind: input, shape index: {}]   ;;  %s841_s2 = inlined_call_operand.hbm [shape: f32[32,128], index: 2, kind: input, shape index: {}]   ;;  %s842_s3 = inlined_call_operand.hbm [shape: f32[2,128,128], index: 3, kind: input, shape index: {}]   ;;  %s843_s4 = inlined_call_operand.hbm [shape: f32[8,128], index: 4, kind: output, shape index: {}]  }
   0x1   :  { %10 = vsyncpa [#allocation6], 0 }
   0x2   :  { %11 = vsyncpa [#allocation9], 0 }
   0x3   :  { %12 = vsyncpa [#allocation4], 0  ;;  %s720_s15 = smov [#allocation5]   ;;  %s721_s17 = smov [#allocation2]  }
   0x4   :  { %s29_s16 = sshll.u32 %s720_s15, 4  ;;  %s19_s18 = sshll.u32 %s721_s17, 4  ;;  %s30_s16 = int_to_ptr.vmem [resolvable:$true] %s29_s16  ;;  %s20_s18 = int_to_ptr.vmem [resolvable:$true] %s19_s18 }
   0x5   :  { %s602_s21 = scalar_lea.hbm %s840_s1, 128 }
   0x6   :  { %p603_p0 = scmp.ne.s32.totalorder %s840_s1, %s602_s21  ;;  %p606_p1 = scmp.lt.u32.totalorder %s602_s21, %s840_s1 }
   0x8   :  { %p608_p2 = pnand %p606_p1, %p603_p0 }
   0xa   :  { %611 = shalt.err (!%p608_p2)
}
   0xb   :  { %s612_s26 = scalar_lea.vmem %s30_s16, 128  ;;  %p617_p4 = scmp.lt.s32.totalorder %s30_s16, %s30_s16 }
   0xc   :  { %p613_p3 = scmp.ne.s32.totalorder %s30_s16, %s612_s26  ;;  %p618_p5 = scmp.lt.s32.totalorder %s612_s26, %s612_s26 }
   0xe   :  { %p619_p6 = por %p618_p5, %p617_p4 }
  0x10   :  { %p620_p7 = pnand %p619_p6, %p613_p3 }
  0x12   :  { %623 = shalt.err (!%p620_p7)
}
  0x13   :  { %32 = dma.hbm_to_vmem [thread:$0]  %s840_s1, 128, %s30_s16, [#allocation6]  }
  0x14   :  { %s624_s5 = scalar_lea.hbm %s839_s0, 128 }
  0x15   :  { %p625_p8 = scmp.ne.s32.totalorder %s839_s0, %s624_s5  ;;  %p628_p9 = scmp.lt.u32.totalorder %s624_s5, %s839_s0 }
  0x17   :  { %p630_p10 = pnand %p628_p9, %p625_p8 }
  0x19   :  { %633 = shalt.err (!%p630_p10)
}
  0x1a   :  { %s634_s10 = scalar_lea.vmem %s20_s18, 128  ;;  %p639_p12 = scmp.lt.s32.totalorder %s20_s18, %s20_s18 }
  0x1b   :  { %p635_p11 = scmp.ne.s32.totalorder %s20_s18, %s634_s10  ;;  %p640_p13 = scmp.lt.s32.totalorder %s634_s10, %s634_s10 }
  0x1d   :  { %p641_p0 = por %p640_p13, %p639_p12 }
  0x1f   :  { %p642_p1 = pnand %p641_p0, %p635_p11 }
  0x21   :  { %645 = shalt.err (!%p642_p1)
}
  0x22   :  { %22 = dma.hbm_to_vmem [thread:$0]  %s839_s0, 128, %s20_s18, [#allocation3]  }
  0x23   :  { %s722_s12 = smov [#allocation7]   ;;  %s646_s16 = scalar_lea.hbm %s841_s2, 512 }
  0x24   :  { %s38_s13 = sshll.u32 %s722_s12, 4  ;;  %p647_p2 = scmp.ne.s32.totalorder %s841_s2, %s646_s16  ;;  %s39_s13 = int_to_ptr.vmem [resolvable:$true] %s38_s13 }
  0x25   :  { %p650_p3 = scmp.lt.u32.totalorder %s646_s16, %s841_s2 }
  0x27   :  { %p652_p4 = pnand %p650_p3, %p647_p2 }
  0x29   :  { %655 = shalt.err (!%p652_p4)
}
  0x2a   :  { %s656_s22 = scalar_lea.vmem %s39_s13, 512  ;;  %p661_p6 = scmp.lt.s32.totalorder %s39_s13, %s39_s13 }
  0x2b   :  { %p657_p5 = scmp.ne.s32.totalorder %s39_s13, %s656_s22  ;;  %p662_p7 = scmp.lt.s32.totalorder %s656_s22, %s656_s22 }
  0x2d   :  { %p663_p8 = por %p662_p7, %p661_p6 }
  0x2f   :  { %p664_p9 = pnand %p663_p8, %p657_p5 }
  0x31   :  { %667 = shalt.err (!%p664_p9)
}
  0x32   :  { %s723_s0 = smov 128   ;;  %s724_s18 = smov 8  }
  0x33   :  { %44 = dma.hbm_to_vmem [thread:$0]  %s841_s2, 512, %s39_s13, [#allocation6], %s723_s0, %s723_s0, %s724_s18  }
  0x34   :  { %s725_s25 = smov [#allocation8]   ;;  %s668_s29 = scalar_lea.hbm %s842_s3, 4096 }
  0x35   :  { %s50_s26 = sshll.u32 %s725_s25, 4  ;;  %p669_p10 = scmp.ne.s32.totalorder %s842_s3, %s668_s29  ;;  %s51_s26 = int_to_ptr.vmem [resolvable:$true] %s50_s26 }
  0x36   :  { %p672_p11 = scmp.lt.u32.totalorder %s668_s29, %s842_s3 }
  0x38   :  { %p674_p12 = pnand %p672_p11, %p669_p10 }
  0x3a   :  { %677 = shalt.err (!%p674_p12)
}
  0x3b   :  { %s678_s8 = scalar_lea.vmem %s51_s26, 4096  ;;  %p683_p0 = scmp.lt.s32.totalorder %s51_s26, %s51_s26 }
  0x3c   :  { %p679_p13 = scmp.ne.s32.totalorder %s51_s26, %s678_s8  ;;  %p684_p1 = scmp.lt.s32.totalorder %s678_s8, %s678_s8 }
  0x3e   :  { %p685_p2 = por %p684_p1, %p683_p0 }
  0x40   :  { %p686_p3 = pnand %p685_p2, %p679_p13 }
  0x42   :  { %689 = shalt.err (!%p686_p3)
}
  0x43   :  { %56 = dma.hbm_to_vmem [thread:$0]  %s842_s3, 4096, %s51_s26, [#allocation9], %s723_s0, %s723_s0, %s724_s18  }
  0x44   :  { %712 = dma.done.wait [#allocation3], 128  }
  0x45   :  { %713 = vsyncadd [#allocation3], 4294967168 }
  0x46   :  { %714 = dma.done.wait [#allocation6], 640  }
  0x47   :  { %715 = vsyncadd [#allocation6], 4294966656 }
  0x48   :  { %716 = dma.done.wait [#allocation9], 4096  }
  0x49   :  { %717 = vsyncadd [#allocation9], 4294963200  ;;  %v726_v0 = vmov 0.0|0.0   ;;  %vm727_vm0 = vmmov 0   ;;  %v728_v1 = vmov 0.0   ;;  %vm70_vm1 = vcmask 261120  }
  0x4a   :  { %532 = vmatprep.subr.bf16.mxu0 %v726_v0  ;;  %459 = vmatprep.mubr.msk.f32.mxu0 %vm727_vm0, %v728_v1  ;;  %v107_v2 = vld [vmem:[#allocation7] sm:$0xff]  ;;  %v108_v3 = vld [vmem:[#allocation7 + $0x8] sm:$0xff]  ;;  %v109_v4 = vld [vmem:[#allocation7 + $0x10] sm:$0xff]  ;;  %v97_v31 = vlaneseq  ;;  %s729_s3 = smov [#allocation10]  }
  0x4b   :  { %538 = vmatprep.subr.bf16.mxu1 %v726_v0  ;;  %494 = vmatprep.mubr.msk.f32.mxu1 %vm727_vm0, %v728_v1  ;;  %v533_v5 = vpack.c.bf16 %v108_v3, %v107_v2  ;;  %v110_v6 = vld [vmem:[#allocation7 + $0x18] sm:$0xff]  ;;  %v69_v7 = vld [vmem:[#allocation2] sm:$0xff]  ;;  %v198_v9 = vld [vmem:[#allocation8] sm:$0xff]  ;;  %s397_s10 = sshll.u32 %s729_s3, 4  ;;  %s398_s10 = int_to_ptr.vmem [resolvable:$true] %s397_s10 }
  0x4c   :  { %v71_v8 = vsel %vm70_vm1, %v69_v7, 0.0  ;;  %v199_v10 = vld [vmem:[#allocation8 + $0x8] sm:$0xff]  ;;  %v536_v11 = vpack.c.bf16 %v110_v6, %v109_v4  ;;  %v98_v32 = vshrl.u32 %v97_v31, 7  ;;  %v90_v33 = vld [vmem:[#allocation5] sm:$0x1]  ;;  %v200_v44 = vld [vmem:[#allocation8 + $0x10] sm:$0xff]  ;;  %p695_p5 = scmp.lt.s32.totalorder %s398_s10, %s398_s10 }
  0x4d   :  { %534 = vmatpush3.bf16.msra.mxu0 %v533_v5  ;;  %v72_v12 = vrot.slane %v71_v8, 4  ;;  %v539_v13 = vpack.c.bf16 %v199_v10, %v198_v9  ;;  %v91_v37 = vld [vmem:[#allocation5 + $0x1] sm:$0x1]  ;;  %v202_v47 = vld [vmem:[#allocation8 + $0x20] sm:$0xff]  ;;  %v203_v48 = vld [vmem:[#allocation8 + $0x28] sm:$0xff]  ;;  %s690_s1 = scalar_lea.vmem %s398_s10, 128 }
  0x4e   :  { %535 = vmatprep.subr.bf16.mxu0 %v726_v0  ;;  %v99_v34 = vsub.s32 0, %v98_v32  ;;  %v201_v45 = vld [vmem:[#allocation8 + $0x18] sm:$0xff]  ;;  %v545_v49 = vpack.c.bf16 %v203_v48, %v202_v47  ;;  %v204_v50 = vld [vmem:[#allocation8 + $0x30] sm:$0xff]  ;;  %v206_v53 = vld [vmem:[#allocation8 + $0x40] sm:$0xff]  ;;  %p691_p4 = scmp.ne.s32.totalorder %s398_s10, %s690_s1  ;;  %p696_p6 = scmp.lt.s32.totalorder %s690_s1, %s690_s1 }
  0x4f   :  { %v73_v14 = vadd.f32 %v72_v12, %v71_v8  ;;  %540 = vmatpush3.bf16.msra.mxu1 %v539_v13  ;;  %v542_v46 = vpack.c.bf16 %v201_v45, %v200_v44  ;;  %v205_v51 = vld [vmem:[#allocation8 + $0x38] sm:$0xff]  ;;  %v207_v54 = vld [vmem:[#allocation8 + $0x48] sm:$0xff]  ;;  %v208_v56 = vld [vmem:[#allocation8 + $0x50] sm:$0xff] }
  0x50   :  { %541 = vmatprep.subr.bf16.mxu1 %v726_v0  ;;  %v548_v52 = vpack.c.bf16 %v205_v51, %v204_v50  ;;  %v551_v55 = vpack.c.bf16 %v207_v54, %v206_v53  ;;  %v209_v57 = vld [vmem:[#allocation8 + $0x58] sm:$0xff]  ;;  %v210_v59 = vld [vmem:[#allocation8 + $0x60] sm:$0xff]  ;;  %v211_v60 = vld [vmem:[#allocation8 + $0x68] sm:$0xff]  ;;  %p697_p7 = por %p696_p6, %p695_p5 }
  0x51   :  { %537 = vmatpush3.bf16.msra.mxu0 %v536_v11  ;;  %v74_v15 = vrot.slane %v73_v14, 2  ;;  %v554_v58 = vpack.c.bf16 %v209_v57, %v208_v56  ;;  %v557_v61 = vpack.c.bf16 %v211_v60, %v210_v59  ;;  %v212_v62 = vld [vmem:[#allocation8 + $0x70] sm:$0xff]  ;;  %v213_v63 = vld [vmem:[#allocation8 + $0x78] sm:$0xff]  ;;  %v299_v2 = vld [vmem:[#allocation8 + $0x80] sm:$0xff] }
  0x52   :  { %562 = vmatprep.subr.bf16.mxu0 %v726_v0  ;;  %v300_v3 = vld [vmem:[#allocation8 + $0x88] sm:$0xff]  ;;  %v408_v5 = vld [vmem:[#allocation5 + $0x2] ss:$0 sm:$0xff]  ;;  %p698_p8 = pnand %p697_p7, %p691_p4 }
  0x53   :  { %v75_v16 = vadd.f32 %v74_v15, %v73_v14  ;;  %543 = vmatpush3.bf16.msra.mxu1 %v542_v46  ;;  %v563_v4 = vpack.c.bf16 %v300_v3, %v299_v2  ;;  %v310_v31 = vld [vmem:[#allocation8 + $0xd8] sm:$0xff] }
  0x54   :  { %544 = vmatprep.subr.bf16.mxu1 %v726_v0 }
  0x55   :  { %v76_v17 = vrot.slane %v75_v16, 1 }
  0x57   :  { %v77_v18 = vadd.f32 %v76_v17, %v75_v16  ;;  %546 = vmatpush3.bf16.msra.mxu1 %v545_v49 }
  0x58   :  { %547 = vmatprep.subr.bf16.mxu1 %v726_v0 }
  0x59   :  { %v79_v19 = vmul.f32 0.125, %v77_v18  ;;  %v301_v18 = vld [vmem:[#allocation8 + $0x90] sm:$0xff] }
  0x5b   :  { %v80_v20 = vsub.f32 %v69_v7, %v79_v19  ;;  %549 = vmatpush3.bf16.msra.mxu1 %v548_v52  ;;  %v411_v52 = vld [vmem:[#allocation5 + $0x4] ss:$0 sm:$0xff] }
  0x5c   :  { %550 = vmatprep.subr.bf16.mxu1 %v726_v0 }
  0x5d   :  { %v81_v21 = vmul.f32 %v80_v20, %v80_v20 }
  0x5f   :  { %v82_v22 = vsel %vm70_vm1, %v81_v21, 0.0  ;;  %552 = vmatpush3.bf16.msra.mxu1 %v551_v55  ;;  %v303_v21 = vld [vmem:[#allocation8 + $0xa0] sm:$0xff] }
  0x60   :  { %v83_v23 = vrot.slane %v82_v22, 4  ;;  %553 = vmatprep.subr.bf16.mxu1 %v726_v0 }
  0x62   :  { %v84_v24 = vadd.f32 %v83_v23, %v82_v22  ;;  %v304_v22 = vld [vmem:[#allocation8 + $0xa8] sm:$0xff] }
  0x63   :  { %555 = vmatpush3.bf16.msra.mxu1 %v554_v58  ;;  %v569_v23 = vpack.c.bf16 %v304_v22, %v303_v21 }
  0x64   :  { %v85_v25 = vrot.slane %v84_v24, 2  ;;  %556 = vmatprep.subr.bf16.mxu1 %v726_v0 }
  0x66   :  { %v86_v26 = vadd.f32 %v85_v25, %v84_v24  ;;  %v305_v24 = vld [vmem:[#allocation8 + $0xb0] sm:$0xff]  ;;  %v306_v25 = vld [vmem:[#allocation8 + $0xb8] sm:$0xff] }
  0x67   :  { %558 = vmatpush3.bf16.msra.mxu1 %v557_v61 }
  0x68   :  { %v87_v27 = vrot.slane %v86_v26, 1  ;;  %559 = vmatprep.subr.bf16.mxu1 %v726_v0 }
  0x6a   :  { %v88_v28 = vadd.f32 %v87_v27, %v86_v26  ;;  %v572_v26 = vpack.c.bf16 %v306_v25, %v305_v24  ;;  %v307_v27 = vld [vmem:[#allocation8 + $0xc0] sm:$0xff] }
  0x6c   :  { %v89_v29 = vmul.f32 0.125, %v88_v28  ;;  %v308_v28 = vld [vmem:[#allocation8 + $0xc8] sm:$0xff] }
  0x6e   :  { %v92_v30 = vadd.f32 1e-05, %v89_v29  ;;  %v575_v29 = vpack.c.bf16 %v308_v28, %v307_v27 }
  0x70   :  { %596 = vrsqrt.f32 %v92_v30  ;;  %v309_v30 = vld [vmem:[#allocation8 + $0xd0] sm:$0xff] }
  0x71   :  { %v578_v32 = vpack.c.bf16 %v310_v31, %v309_v30 }
  0x7a   :  { %v597_v35 = vpop.eup %596 }
  0x7b   :  { %v94_v36 = vmul.f32 %v597_v35, %v90_v33  ;;  %v311_v33 = vld [vmem:[#allocation8 + $0xe0] sm:$0xff] }
  0x7d   :  { %v95_v38 = vmul.f32 %v94_v36, %v79_v19  ;;  %v100_v39 = vrot.slane %v94_v36, %v99_v34  ;;  %v302_v19 = vld [vmem:[#allocation8 + $0x98] sm:$0xff]  ;;  %v313_v36 = vld [vmem:[#allocation8 + $0xf0] sm:$0xff] }
  0x7e   :  { %v566_v20 = vpack.c.bf16 %v302_v19, %v301_v18 }
  0x7f   :  { %v96_v40 = vsub.f32 %v91_v37, %v95_v38  ;;  %v101_v41 = vmul.f32 %v100_v39, %v69_v7  ;;  %v314_v37 = vld [vmem:[#allocation8 + $0xf8] sm:$0xff] }
  0x80   :  { %v584_v38 = vpack.c.bf16 %v314_v37, %v313_v36  ;;  %v410_v39 = vld [vmem:[#allocation5 + $0x3] ss:$0 sm:$0xff] }
  0x81   :  { %v105_v42 = vrot.slane %v96_v40, %v99_v34  ;;  %v312_v34 = vld [vmem:[#allocation8 + $0xe8] sm:$0xff] }
  0x82   :  { %v581_v35 = vpack.c.bf16 %v312_v34, %v311_v33 }
  0x83   :  { %v106_v43 = vadd.f32 %v105_v42, %v101_v41 }
  0x85   :  { %460 = vmatmul.mubr.msk.f32.vlgmr.msra.gmra.mrb[0].mxu0 %vm70_vm1, %v106_v43 }
  0x86   :  { %529 = vmatprep.mubr.msk.f32.mxu0 %vm727_vm0, %v728_v1  ;;  %v560_v1 = vpack.c.bf16 %v213_v63, %v212_v62  ;;  %564 = vmatpush3.bf16.msra.mxu0 %v563_v4 }
  0x87   :  { %565 = vmatprep.subr.bf16.mxu0 %v726_v0 }
  0x88   :  { %561 = vmatpush3.bf16.msra.mxu1 %v560_v1 }
  0x8a   :  { %567 = vmatpush3.bf16.msra.mxu0 %v566_v20 }
  0x8b   :  { %568 = vmatprep.subr.bf16.mxu0 %v726_v0 }
  0x8e   :  { %570 = vmatpush3.bf16.msra.mxu0 %v569_v23 }
  0x8f   :  { %571 = vmatprep.subr.bf16.mxu0 %v726_v0 }
  0x92   :  { %573 = vmatpush3.bf16.msra.mxu0 %v572_v26 }
  0x93   :  { %574 = vmatprep.subr.bf16.mxu0 %v726_v0 }
  0x96   :  { %576 = vmatpush3.bf16.msra.mxu0 %v575_v29 }
  0x97   :  { %577 = vmatprep.subr.bf16.mxu0 %v726_v0 }
  0x9a   :  { %579 = vmatpush3.bf16.msra.mxu0 %v578_v32 }
  0x9b   :  { %580 = vmatprep.subr.bf16.mxu0 %v726_v0 }
  0x9e   :  { %582 = vmatpush3.bf16.msra.mxu0 %v581_v35 }
  0x9f   :  { %583 = vmatprep.subr.bf16.mxu0 %v726_v0 }
  0xa2   :  { %585 = vmatpush3.bf16.msra.mxu0 %v584_v38 }
 0x158   :  { %v185_v6 = vpop.f32.mrb[0].mxu0 }
 0x159   :  { %v186_v7 = vadd.f32 %v408_v5, %v185_v6  ;;  %v461_v8 = vpop.f32.mrb[1].mxu0 }
 0x15b   :  { %v189_v9 = vmul.f32 %v186_v7, %v186_v7 }
 0x15d   :  { %v190_v10 = vmul.f32 %v189_v9, %v186_v7 }
 0x15f   :  { %v191_v11 = vmul.f32 0.044715, %v190_v10 }
 0x161   :  { %v192_v12 = vadd.f32 %v191_v11, %v186_v7 }
 0x163   :  { %v193_v13 = vmul.f32 0.7978846, %v192_v12 }
 0x165   :  { %598 = vtanh.f32 %v193_v13 }
 0x16f   :  { %v599_v14 = vpop.eup %598 }
 0x170   :  { %v195_v15 = vadd.f32 1.0, %v599_v14 }
 0x172   :  { %v196_v16 = vmul.f32 0.5, %v195_v15 }
 0x174   :  { %v197_v17 = vmul.f32 %v196_v16, %v186_v7 }
 0x176   :  { %495 = vmatmul.mubr.f32.vlgmr.msra.gmra.mrb[0].mxu1 %v197_v17 }
 0x249   :  { %v285_v40 = vpop.f32.mrb[0].mxu1 }
 0x24a   :  { %v286_v41 = vadd.f32 %v410_v39, %v285_v40  ;;  %v496_v42 = vpop.f32.mrb[1].mxu1 }
 0x24c   :  { %v289_v43 = vmul.f32 %v286_v41, %v286_v41 }
 0x24e   :  { %v290_v44 = vmul.f32 %v289_v43, %v286_v41 }
 0x250   :  { %v291_v45 = vmul.f32 0.044715, %v290_v44 }
 0x252   :  { %v292_v46 = vadd.f32 %v291_v45, %v286_v41 }
 0x254   :  { %v293_v47 = vmul.f32 0.7978846, %v292_v46 }
 0x256   :  { %600 = vtanh.f32 %v293_v47 }
 0x260   :  { %v601_v48 = vpop.eup %600 }
 0x261   :  { %v295_v49 = vadd.f32 1.0, %v601_v48 }
 0x263   :  { %v296_v50 = vmul.f32 0.5, %v295_v49 }
 0x265   :  { %v297_v51 = vmul.f32 %v296_v50, %v286_v41 }
 0x267   :  { %530 = vmatmul.mubr.f32.vlgmr.msra.gmra.mrb[2].mxu0 %v297_v51 }
 0x33a   :  { %v386_v0 = vpop.f32.mrb[2].mxu0 }
 0x33b   :  { %v387_v53 = vadd.f32 %v411_v52, %v386_v0  ;;  %v531_v54 = vpop.f32.mrb[3].mxu0 }
 0x33d   :  { %390 = vst [vmem:[#allocation10] sm:$0xff] %v387_v53 }
 0x33e   :  { %701 = shalt.err (!%p698_p8)
}
 0x33f   :  { %s702_s13 = scalar_lea.hbm %s843_s4, 128 }
 0x340   :  { %p703_p9 = scmp.ne.s32.totalorder %s843_s4, %s702_s13  ;;  %p706_p10 = scmp.lt.u32.totalorder %s702_s13, %s843_s4 }
 0x342   :  { %p708_p11 = pnand %p706_p10, %p703_p9 }
 0x344   :  { %711 = shalt.err (!%p708_p11)
}
 0x345   :  { %400 = dma.vmem_to_hbm [thread:$0]  %s398_s10, 128, %s843_s4, [#allocation4]  }
 0x346   :  { %718 = dma.done.wait [#allocation4], 128  }
 0x347   :  { %719 = vsyncadd [#allocation4], 4294967168 }
 0x348   :  { %404 = vsyncpa [#allocation3], 1 }
 0x349   :  { %405 = vsyncpa [#allocation6], 1 }
 0x34a   :  { %406 = vsyncpa [#allocation9], 1 }
 0x34b   :  { %407 = vsyncpa [#allocation4], 1 }

</bundles_post_ra>
